<compile_context>
chip_gen: v6e
topology: v6e:2x2x1
jax: 0.10.0
libtpu: 0.0.40
codegen_flags: <defaults>
</compile_context>

<pallas_src>
import jax
import jax.numpy as jnp
import numpy as np
from jax import lax
from jax.experimental import pallas as pl
from jax.experimental.pallas import tpu as pltpu

_LANE = 128          # vreg lane width
_SUBLANE = 8         # vreg sublane count
_POOL_CHUNK = 128    # lane chunk streamed while pooling
_MUL_CHUNK = 512     # lane chunk streamed while applying the gate
_MAX_UNROLL = 16     # python-unroll small chunk loops; lax.fori_loop above this


def _round_up(x, m):
    return (x + m - 1) // m * m


def _vmem_limit_bytes():
    """Per-platform VMEM cap the budgeting below is derived from."""
    kind = ""
    try:
        kind = jax.devices()[0].device_kind.lower()
    except Exception:
        pass
    if "v7" in kind or "7x" in kind:
        return 48 * 1024 * 1024     # 64 MiB physical per TensorCore: leave headroom
    if any(t in kind for t in ("v4", "v5", "v6")):
        return 96 * 1024 * 1024     # 128 MiB physical VMEM
    return 16 * 1024 * 1024         # conservative for unknown/older chips


def eca_kernel(w_ref, x_ref, o_ref, conv_ref):
    """ECA forward for one (bt, C, HW) block.

    w_ref    : SMEM (k,) f32   Conv1d taps.
    x_ref    : VMEM (bt, C, HW) input block  (C on sublanes, HW on lanes).
    o_ref    : VMEM (bt, C, HW) output block.
    conv_ref : VMEM (bt, lp + C + pad, 1) f32 zero-padded pooled scratch used
               for the k-tap conv across channels (static sublane shifts).
    """
    bt, c, hw = x_ref.shape
    k = w_ref.shape[0]
    pad = k // 2
    lp = conv_ref.shape[1] - c - pad          # aligned left padding (multiple of 8)

    # ---- 1) global average pool over HW (lane axis), f32 accumulation -------
    # VPU-accumulate 128-lane chunks into a single (bt, c, 128) accumulator and
    # do ONE cross-lane (XLU) reduction at the end; remainder chunk handled so
    # HW need not be a multiple of 128.
    n_chunks = hw // _POOL_CHUNK
    rem = hw - n_chunks * _POOL_CHUNK

    def chunk_f32(off, width):
        return x_ref[:, :, pl.ds(off, width)].astype(jnp.float32)

    if n_chunks >= 2:
        acc = jnp.zeros((bt, c, _POOL_CHUNK), jnp.float32)
        if n_chunks <= _MAX_UNROLL:
            for i in range(n_chunks):
                acc = acc + chunk_f32(i * _POOL_CHUNK, _POOL_CHUNK)
        else:
            def body(i, a):
                off = pl.multiple_of(i * _POOL_CHUNK, _POOL_CHUNK)
                return a + chunk_f32(off, _POOL_CHUNK)
            acc = lax.fori_loop(0, n_chunks, body, acc)
        total = jnp.sum(acc, axis=2, keepdims=True)
    elif n_chunks == 1:
        total = jnp.sum(chunk_f32(0, _POOL_CHUNK), axis=2, keepdims=True)
    else:
        total = jnp.zeros((bt, c, 1), jnp.float32)
    if rem:
        total = total + jnp.sum(chunk_f32(n_chunks * _POOL_CHUNK, rem),
                                axis=2, keepdims=True)
    pooled = total * (1.0 / hw)                       # (bt, c, 1) f32

    # ---- 2) Conv1d(1,1,k,pad=k//2,bias=False) across channels ---------------
    # O(kC) shifted adds on the channel (sublane) axis instead of an O(C^2)
    # band-matrix matmul; taps are scalars in SMEM.  Only the padding rows of
    # the scratch are zeroed; pooled lands at the aligned offset `lp`.
    if lp:
        conv_ref[:, pl.ds(0, lp), :] = jnp.zeros((bt, lp, 1), jnp.float32)
    if pad:
        conv_ref[:, pl.ds(lp + c, pad), :] = jnp.zeros((bt, pad, 1), jnp.float32)
    conv_ref[:, pl.ds(lp, c), :] = pooled

    y = jnp.zeros((bt, c, 1), jnp.float32)
    for j in range(k):                                 # k is tiny (3 or 5)
        y = y + w_ref[j] * conv_ref[:, pl.ds(lp - pad + j, c), :]

    # ---- 3) sigmoid gate, broadcast over HW; lane-chunked lean stores -------
    gate = jax.nn.sigmoid(y).astype(x_ref.dtype)       # (bt, c, 1)

    n_mul = hw // _MUL_CHUNK
    mrem = hw - n_mul * _MUL_CHUNK
    if n_mul <= _MAX_UNROLL:
        for i in range(n_mul):
            off = i * _MUL_CHUNK
            o_ref[:, :, pl.ds(off, _MUL_CHUNK)] = (
                x_ref[:, :, pl.ds(off, _MUL_CHUNK)] * gate)
    else:
        def mbody(i, carry):
            off = pl.multiple_of(i * _MUL_CHUNK, _MUL_CHUNK)
            o_ref[:, :, pl.ds(off, _MUL_CHUNK)] = (
                x_ref[:, :, pl.ds(off, _MUL_CHUNK)] * gate)
            return carry
        lax.fori_loop(0, n_mul, mbody, 0)
    if mrem:
        off = n_mul * _MUL_CHUNK
        o_ref[:, :, pl.ds(off, mrem)] = x_ref[:, :, pl.ds(off, mrem)] * gate


def eca_block(x_nchw, weight):
    """x_nchw: (B, C, H, W) like PyTorch.  weight: Conv1d taps, shape (K,) or (1,1,K)."""
    B, C, H, W = x_nchw.shape
    HW = H * W
    w = jnp.asarray(weight, dtype=jnp.float32).reshape(-1)
    k = int(w.shape[0])
    pad = k // 2
    lp = _round_up(pad, _SUBLANE)                 # aligned left padding of conv scratch
    conv_rows = lp + C + pad

    x3 = x_nchw.reshape(B, C, HW)                 # free, contiguous reshape of NCHW
    itemsize = jnp.dtype(x_nchw.dtype).itemsize

    # ---- VMEM budgeting (fixes the missing x4 double-buffer factor) ---------
    vmem_limit = _vmem_limit_bytes()
    headroom = 4 * 1024 * 1024                    # Mosaic internal scratch / sems / spills
    per_elem_block = C * HW * itemsize            # one batch row of x (== one of o)
    conv_scratch_per_bt = _round_up(conv_rows, _SUBLANE) * _LANE * 4
    pool_live_per_bt = 2 * C * _POOL_CHUNK * 4    # f32 accumulator + current chunk
    mul_live_per_bt = 2 * C * min(HW, _MUL_CHUNK) * itemsize
    per_bt = (4 * per_elem_block                  # double-buffered input + output blocks
              + conv_scratch_per_bt
              + max(pool_live_per_bt, mul_live_per_bt))
    budget = max(vmem_limit - headroom, per_bt)
    bt_vmem_max = max(1, budget // per_bt)
    # TODO(synk): if a single batch row exceeds the budget (very large C*HW),
    # switch to a two-pass HW-tiled design (pool pass + gate pass).

    # Keep the grid long enough (>= ~4 steps when B allows) so BlockSpec
    # double-buffering overlaps HBM traffic with compute and the batch axis can
    # shard across both v7x TensorCores.
    min_steps = min(4, B)
    bt_grid_max = max(1, B // min_steps)

    bt = int(max(1, min(bt_vmem_max, bt_grid_max, B)))
    # bt need not divide B: the cdiv grid's boundary block is masked (or
    # idempotently recomputed), and each batch row is independent, so results
    # are unaffected — no bt=1 fallback for awkward/prime batch sizes.
    grid = (pl.cdiv(B, bt),)

    # TODO(synk): for very small per-step blocks (late ResNet stages) consider
    # pipeline_mode=pl.Buffered(3) on the x/o specs, and an NHWC (C-on-lanes)
    # block layout when HW (e.g. 49/196) is far from a multiple of 128.
    out3 = pl.pallas_call(
        eca_kernel,
        out_shape=jax.ShapeDtypeStruct((B, C, HW), x_nchw.dtype),
        grid_spec=pltpu.PrefetchScalarGridSpec(
            num_scalar_prefetch=0,
            grid=grid,
            in_specs=[
                pl.BlockSpec(memory_space=pltpu.MemorySpace.SMEM),   # conv taps
                pl.BlockSpec((bt, C, HW), lambda b: (b, 0, 0)),      # x block
            ],
            out_specs=pl.BlockSpec((bt, C, HW), lambda b: (b, 0, 0)),
            scratch_shapes=[pltpu.VMEM((bt, conv_rows, 1), jnp.float32)],
        ),
        compiler_params=pltpu.CompilerParams(
            dimension_semantics=("parallel",),
            vmem_limit_bytes=int(vmem_limit),
        ),
    )(w, x3)

    return out3.reshape(B, C, H, W)


def eca_ref(x_nchw, weight):
    """Plain-JAX reference matching the PyTorch forward exactly."""
    B, C, H, W = x_nchw.shape
    w = weight.reshape(-1)
    k = w.shape[0]
    pad = k // 2
    pooled = x_nchw.mean(axis=(2, 3))                            # (B, C)
    padded = jnp.pad(pooled, ((0, 0), (pad, pad)))
    y = sum(w[j] * padded[:, j:j + C] for j in range(k))         # (B, C)
    gate = jax.nn.sigmoid(y)
    return x_nchw * gate[:, :, None, None]


if __name__ == "__main__":
    B, C, H, W = 2, 4, 16, 16
    kernel_size = 3

    key = jax.random.PRNGKey(0)
    kx, kw = jax.random.split(key)
    x = jax.random.normal(kx, (B, C, H, W), dtype=jnp.float32)

    # Deterministic Conv1d(1, 1, k, bias=False) weight init (uniform with the
    # PyTorch default fan-in bound 1/sqrt(k)); synthetic — no checkpoint load.
    bound = 1.0 / np.sqrt(kernel_size)
    w = jax.random.uniform(kw, (kernel_size,), dtype=jnp.float32,
                           minval=-bound, maxval=bound)

    out = jax.block_until_ready(eca_block(x, w))
    ref = eca_ref(x, w)

    assert out.shape == (B, C, H, W)
    np.testing.assert_allclose(np.asarray(out), np.asarray(ref),
                               rtol=1e-5, atol=1e-5)
    print("KERNEL_OK")
</pallas_src>

<mosaic_0001>
module attributes {stable_mosaic.version = 11 : i64} {
  func.func @eca_kernel(%arg0: i32, %arg1: memref<3xf32, #tpu.memory_space<smem>>, %arg2: memref<1x4x256xf32, #tpu.memory_space<vmem>>, %arg3: memref<1x4x256xf32, #tpu.memory_space<vmem>>, %arg4: memref<1x13x1xf32, #tpu.memory_space<vmem>>) attributes {dimension_semantics = [#tpu.dimension_semantics<parallel>], iteration_bounds = array<i64: 2>, scalar_prefetch = 0 : i64, scratch_operands = 1 : i64, tpu.core_type = #tpu.core_type<tc>, window_params = [{transform_indices = @transform_0, window_bounds = array<i64: 3>}, {transform_indices = @transform_1, window_bounds = array<i64: 1, 4, 256>}, {transform_indices = @transform_2, window_bounds = array<i64: 1, 4, 256>}]} {
    %cst = arith.constant 0.000000e+00 : f32
    %0 = vector.broadcast %cst : f32 to vector<1x4x128xf32>
    %c0 = arith.constant 0 : index
    %c0_0 = arith.constant 0 : index
    %c0_1 = arith.constant 0 : index
    %1 = vector.load %arg2[%c0, %c0_0, %c0_1] : memref<1x4x256xf32, #tpu.memory_space<vmem>>, vector<1x4x128xf32>
    %2 = arith.addf %0, %1 : vector<1x4x128xf32>
    %c0_2 = arith.constant 0 : index
    %c0_3 = arith.constant 0 : index
    %c128 = arith.constant 128 : index
    %3 = vector.load %arg2[%c0_2, %c0_3, %c128] : memref<1x4x256xf32, #tpu.memory_space<vmem>>, vector<1x4x128xf32>
    %4 = arith.addf %2, %3 : vector<1x4x128xf32>
    %cst_4 = arith.constant dense<0.000000e+00> : vector<1x4xf32>
    %5 = vector.multi_reduction <add>, %4, %cst_4 [2] : vector<1x4x128xf32> to vector<1x4xf32>
    %6 = vector.shape_cast %5 : vector<1x4xf32> to vector<1x4x1xf32>
    %cst_5 = arith.constant 3.906250e-03 : f32
    %7 = vector.broadcast %cst_5 : f32 to vector<1x4x1xf32>
    %8 = arith.mulf %6, %7 : vector<1x4x1xf32>
    %cst_6 = arith.constant 0.000000e+00 : f32
    %9 = vector.broadcast %cst_6 : f32 to vector<1x8x1xf32>
    %c0_7 = arith.constant 0 : index
    %c0_8 = arith.constant 0 : index
    %c0_9 = arith.constant 0 : index
    %10 = vector.load %arg4[%c0_7, %c0_8, %c0_9] : memref<1x13x1xf32, #tpu.memory_space<vmem>>, vector<1x8x1xf32>
    tpu.vector_store %arg4[%c0_7, %c0_8, %c0_9], %9 {strides = array<i32>} : memref<1x13x1xf32, #tpu.memory_space<vmem>>, vector<1x8x1xf32>,
    %cst_10 = arith.constant 0.000000e+00 : f32
    %11 = vector.broadcast %cst_10 : f32 to vector<1x1x1xf32>
    %c0_11 = arith.constant 0 : index
    %c12 = arith.constant 12 : index
    %c0_12 = arith.constant 0 : index
    %12 = vector.load %arg4[%c0_11, %c12, %c0_12] : memref<1x13x1xf32, #tpu.memory_space<vmem>>, vector<1x1x1xf32>
    tpu.vector_store %arg4[%c0_11, %c12, %c0_12], %11 {strides = array<i32>} : memref<1x13x1xf32, #tpu.memory_space<vmem>>, vector<1x1x1xf32>,
    %c0_13 = arith.constant 0 : index
    %c8 = arith.constant 8 : index
    %c0_14 = arith.constant 0 : index
    %13 = vector.load %arg4[%c0_13, %c8, %c0_14] : memref<1x13x1xf32, #tpu.memory_space<vmem>>, vector<1x4x1xf32>
    tpu.vector_store %arg4[%c0_13, %c8, %c0_14], %8 {strides = array<i32>} : memref<1x13x1xf32, #tpu.memory_space<vmem>>, vector<1x4x1xf32>,
    %cst_15 = arith.constant 0.000000e+00 : f32
    %14 = vector.broadcast %cst_15 : f32 to vector<1x4x1xf32>
    %c0_16 = arith.constant 0 : index
    %15 = memref.load %arg1[%c0_16] : memref<3xf32, #tpu.memory_space<smem>>
    %c0_17 = arith.constant 0 : index
    %c7 = arith.constant 7 : index
    %c0_18 = arith.constant 0 : index
    %16 = vector.load %arg4[%c0_17, %c7, %c0_18] : memref<1x13x1xf32, #tpu.memory_space<vmem>>, vector<1x4x1xf32>
    %17 = vector.broadcast %15 : f32 to vector<1x4x1xf32>
    %18 = arith.mulf %17, %16 : vector<1x4x1xf32>
    %19 = arith.addf %14, %18 : vector<1x4x1xf32>
    %c1 = arith.constant 1 : index
    %20 = memref.load %arg1[%c1] : memref<3xf32, #tpu.memory_space<smem>>
    %c0_19 = arith.constant 0 : index
    %c8_20 = arith.constant 8 : index
    %c0_21 = arith.constant 0 : index
    %21 = vector.load %arg4[%c0_19, %c8_20, %c0_21] : memref<1x13x1xf32, #tpu.memory_space<vmem>>, vector<1x4x1xf32>
    %22 = vector.broadcast %20 : f32 to vector<1x4x1xf32>
    %23 = arith.mulf %22, %21 : vector<1x4x1xf32>
    %24 = arith.addf %19, %23 : vector<1x4x1xf32>
    %c2 = arith.constant 2 : index
    %25 = memref.load %arg1[%c2] : memref<3xf32, #tpu.memory_space<smem>>
    %c0_22 = arith.constant 0 : index
    %c9 = arith.constant 9 : index
    %c0_23 = arith.constant 0 : index
    %26 = vector.load %arg4[%c0_22, %c9, %c0_23] : memref<1x13x1xf32, #tpu.memory_space<vmem>>, vector<1x4x1xf32>
    %27 = vector.broadcast %25 : f32 to vector<1x4x1xf32>
    %28 = arith.mulf %27, %26 : vector<1x4x1xf32>
    %29 = arith.addf %24, %28 : vector<1x4x1xf32>
    %30 = arith.negf %29 : vector<1x4x1xf32>
    %31 = math.exp %30 : vector<1x4x1xf32>
    %cst_24 = arith.constant 1.000000e+00 : f32
    %32 = vector.broadcast %cst_24 : f32 to vector<1x4x1xf32>
    %33 = arith.addf %32, %31 : vector<1x4x1xf32>
    %34 = arith.divf %32, %33 : vector<1x4x1xf32>
    %c0_25 = arith.constant 0 : index
    %c0_26 = arith.constant 0 : index
    %c0_27 = arith.constant 0 : index
    %35 = vector.load %arg2[%c0_25, %c0_26, %c0_27] : memref<1x4x256xf32, #tpu.memory_space<vmem>>, vector<1x4x256xf32>
    %36 = vector.broadcast %34 : vector<1x4x1xf32> to vector<1x4x256xf32>
    %37 = arith.mulf %35, %36 : vector<1x4x256xf32>
    %c0_28 = arith.constant 0 : index
    %c0_29 = arith.constant 0 : index
    %c0_30 = arith.constant 0 : index
    %38 = vector.load %arg3[%c0_28, %c0_29, %c0_30] : memref<1x4x256xf32, #tpu.memory_space<vmem>>, vector<1x4x256xf32>
    tpu.vector_store %arg3[%c0_28, %c0_29, %c0_30], %37 {strides = array<i32>} : memref<1x4x256xf32, #tpu.memory_space<vmem>>, vector<1x4x256xf32>,
    return
  }
  func.func @transform_0(%arg0: i32) -> i32 {
    %c0_i32 = arith.constant 0 : i32
    %c0_i32_0 = arith.constant 0 : i32
    return %c0_i32 : i32
  }
  func.func @transform_1(%arg0: i32) -> (i32, i32, i32) {
    %c0_i32 = arith.constant 0 : i32
    %c0_i32_0 = arith.constant 0 : i32
    %c0_i32_1 = arith.constant 0 : i32
    return %arg0, %c0_i32, %c0_i32_0 : i32, i32, i32
  }
  func.func @transform_2(%arg0: i32) -> (i32, i32, i32) {
    %c0_i32 = arith.constant 0 : i32
    %c0_i32_0 = arith.constant 0 : i32
    %c0_i32_1 = arith.constant 0 : i32
    return %arg0, %c0_i32, %c0_i32_0 : i32, i32, i32
  }
}

</mosaic_0001>

<bundles_post_ra>
// kernel: tpu_custom_call.1
= control target key start
LH: loop header
LB: loop body
LE: loop exit
PB: predicated region body
PF: predicated region fallthrough
CT: control target
= control target key end

     0   :  { %7 = vsyncpa [#allocation6], 0  ;;  %s691_s0 = inlined_call_operand.hbm [shape: f32[3], index: 0, kind: input, shape index: {}]   ;;  %s692_s1 = inlined_call_operand.hbm [shape: f32[2,4,256], index: 1, kind: input, shape index: {}]   ;;  %s693_s2 = inlined_call_operand.hbm [shape: f32[2,4,256], index: 2, kind: output, shape index: {}]  }
   0x1   :  { %8 = vsyncpa [#allocation4], 0 }
   0x2   :  { %10 = vsyncpa [#allocation4 + $0x1], 0 }
   0x3   :  { %11 = vsyncpa [#allocation5], 0 }
   0x4   :  { %13 = vsyncpa [#allocation5 + $0x1], 0  ;;  %s536_s9 = smov 0   ;;  %s538_s10 = smov 0  }
   0x5   :  { %s540_s11 = smov 0   ;;  %s542_s12 = smov 0  }
   0x6 LB: > { %s557_s13 = sadd.s32 4294967295, %s513_s12   ;;  %s320_s14 = sadd.s32 4294967294, %s513_s12   ;;  %s513_s12 = sphi %s542_s12, %s713_s12   ;;  %s509_s11 = sphi %s540_s11, %s712_s11   ;;  %s505_s10 = sphi %s538_s10, %s711_s10   ;;  %s501_s9 = sphi %s536_s9, %s710_s9  }
   0x7   : > { %p60_p0 = scmp.ne.s32.totalorder %s505_s10, %s501_s9  ;;  %p694_p1 = scmp.eq.s32.totalorder %s557_s13, 0 }
   0x8   : > { %p84_p2 = scmp.eq.s32.totalorder %s557_s13, 1  ;;  %p90_p3 = scmp.eq.s32.totalorder %s320_s14, 1 }
   0x9   : > { %p566_p4 = por %p694_p1, %p60_p0  ;;  %p321_p5 = scmp.ge.s32.totalorder %s513_s12, 1 }
   0xa   : > { %p571_p6 = por %p90_p3, %p60_p0  ;;  %p97_p7 = scmp.lt.s32.totalorder %s513_s12, 3 }
   0xb   : > { %s698_s15 = scalar_select %p566_p4, 1, 0 }
   0xc   : > { %s699_s16 = scalar_select %p571_p6, 1, 0 }
   0xd   : > { %p576_p8 = pnand %p321_p5, %p97_p7  ;;  %s582_s18 = sadd.s32 1, %s513_s12  }
   0xe   : > { %s44_s19 = ssub.s32 %s513_s12, %s582_s18  ;;  %s47_s20 = sadd.s32 1, %s509_s11 }
   0xf   : > { %s700_s17 = scalar_select %p576_p8, 1, 0 }
  0x10   : > { %p349_p10 = pneg %p576_p8  ;;  %p45_p12 = scmp.eq.s32.totalorder %s44_s19, 0 }
  0x11   : > { %p54_p13 = scmp.ne.s32.totalorder %s509_s11, %s505_s10  ;;  %p55_p0 = scmp.eq.s32.totalorder %s513_s12, 0 }
  0x12   : > { %p350_p11 = pnand %p349_p10, %p694_p1  ;;  %p362_p3 = scmp.lt.s32.totalorder %s513_s12, 2 }
  0x13   : > { %s515_s21 = smov [#allocation3]   ;;  %p56_p5 = por %p55_p0, %p54_p13 }
  0x14   : > { %352 = dma.hbm_to_smem (!%p350_p11), %s691_s0, 16, %s515_s21, [#allocation6]  }
  0x15   : > { %s599_s24 = scalar_select %p45_p12, %s509_s11, %s47_s20  }
  0x16   : > { %p603_p7 = por %p84_p2, %p54_p13  ;;  %s119_s26 = sand.u32 1, %s509_s11  }
  0x17   : > { %s339_s27 = sshll.u32 %s513_s12, 7  ;;  %s324_s28 = sshll.u32 %s119_s26, 3 }
  0x18   : > { %s701_s25 = scalar_select %p603_p7, 1, 0 }
  0x19   : > { %s612_s3 = scalar_lea.hbm %s692_s1, %s339_s27  ;;  %s123_s4 = scalar_lea.vmem [#allocation7], %s324_s28 }
  0x1a   : > { %s131_s5 = sshll.u32 %s123_s4, 4  ;;  %p614_p10 = pnand %p362_p3, %p56_p5  ;;  %s132_s5 = int_to_ptr.vmem [resolvable:$true] %s131_s5 }
  0x1b   : > { %s120_s7 = scalar_lea.sflag [#allocation4], %s119_s26  ;;  %s417_s8 = scalar_lea.hbm %s612_s3, 128 }
  0x1c   : > { %p418_p2 = scmp.ne.s32.totalorder %s612_s3, %s417_s8  ;;  %p419_p11 = pneg %p614_p10 }
  0x1d   : > { %s422_s20 = scalar_lea.hbm %s692_s1, 256  ;;  %p423_p0 = scmp.lt.s32.totalorder %s612_s3, %s692_s1 }
  0x1e   : > { %p420_p12 = pnand %p419_p11, %p418_p2  ;;  %p424_p3 = scmp.lt.s32.totalorder %s422_s20, %s417_s8 }
  0x20   : > { %p421_p13 = pneg %p420_p12  ;;  %p425_p5 = por %p424_p3, %p423_p0 }
  0x22   : > { %p426_p9 = pnand %p425_p5, %p421_p13 }
  0x24   : > { %429 = shalt.err (!%p426_p9)
}
  0x25   : > { %s430_s23 = scalar_lea.vmem %s132_s5, 128  ;;  %s516_s26 = smov [#allocation7]  }
  0x26   : > { %p431_p1 = scmp.ne.s32.totalorder %s132_s5, %s430_s23  ;;  %s435_s27 = sshll.u32 %s516_s26, 4  ;;  %s436_s27 = int_to_ptr.vmem [resolvable:$false] %s435_s27 }
  0x27   : > { %s437_s28 = scalar_lea.vmem %s436_s27, 256  ;;  %p438_p2 = scmp.lt.s32.totalorder %s132_s5, %s436_s27 }
  0x28   : > { %p433_p6 = pnand %p431_p1, %p419_p11  ;;  %p439_p12 = scmp.lt.s32.totalorder %s437_s28, %s430_s23 }
  0x2a   : > { %p434_p7 = pneg %p433_p6  ;;  %p440_p4 = por %p439_p12, %p438_p2 }
  0x2c   : > { %p441_p8 = pnand %p440_p4, %p434_p7 }
  0x2e   : > { %444 = shalt.err (!%p441_p8)
}
  0x2f   : > { %356 = dma.hbm_to_vmem [thread:$0]  (!%p614_p10), %s612_s3, 128, %s132_s5, %s120_s7  }
  0x30   : > { %p703_p13 = scmp.ne.s32.totalorder %s700_s17, 0 }
  0x31   : > { %p704_p9 = scmp.eq.s32.totalorder (!%p703_p13), %s557_s13, 0 }
  0x32   : > { %140 = sbr.rel (%p703_p13) target bundleno = 394 (0x18a), region = 28 }
  0x37   : > { %488 = dma.done.wait (%p704_p9), [#allocation6], 16   ;;  %p705_p1 = pmov %p704_p9 }
  0x38   : > { %s639_s29 = sand.u32 1, %s505_s10   ;;  %p706_p4 = scmp.ne.s32.totalorder %s698_s15, 0 }
  0x39   : > { %490 = vsyncadd (%p705_p1), [#allocation6], 4294967280  ;;  %s329_s30 = sshll.u32 %s639_s29, 3  ;;  %s147_s4 = scalar_lea.sflag [#allocation4], %s639_s29 }
  0x3a   : > { %s645_s3 = scalar_lea.vmem [#allocation7], %s329_s30 }
  0x3b   : > { %492 = dma.done.wait (%p706_p4), %s147_s4, 128  }
  0x3c   : > { %494 = vsyncadd (%p706_p4), %s147_s4, 4294967168 }
  0x3d   : > { %155 = sfence }
  0x3e   : > { %v172_v0 = vld [vmem:[%s645_s3] sm:$0xf]  ;;  %v174_v1 = vld [vmem:[%s645_s3 + $0x4] sm:$0xf]  ;;  %vm176_vm0 = vcmask 1043456   ;;  %vm181_vm1 = vcmask 7168   ;;  %v216_v25 = vlaneseq }
  0x3f   : > { %v175_v2 = vadd.f32 %v174_v1, %v172_v0  ;;  %vm183_vm2 = vcmask 0   ;;  %v517_v3 = vmov 0.0   ;;  %v518_v5 = vmov 0   ;;  %s187_s17 = sld [smem:[#allocation3]]  ;;  %v208_v29 = vld [vmem:[%s645_s3] sm:$0xff]  ;;  %s340_s6 = sshll.u32 %s557_s13, 7 }
  0x40   : > { %182 = vst.msk [vmem:[#allocation2] sm:$0xff] %vm181_vm1, %v517_v3  ;;  %401 = vset.pattern.permute.xlu0 %v518_v5  ;;  %vm185_vm3 = vcmask 3072   ;;  %s331_s15 = sld [smem:[#allocation3 + $0x1]]  ;;  %v519_v23 = vmov 839922192   ;;  %v217_v27 = vshrl.u32 %v216_v25, 7  ;;  %s236_s20 = scalar_lea.hbm %s693_s2, %s340_s6 }
  0x41   : > { %184 = vst.msk [vmem:[#allocation2 + $0xc] sm:$0x1] %vm183_vm2, %v517_v3  ;;  %v177_v4 = vsel %vm176_vm0, %v175_v2, 0.0  ;;  %s332_s5 = sld [smem:[#allocation3 + $0x2]]  ;;  %v214_v24 = vunpack.c.l.s4 %v519_v23  ;;  %s171_s7 = scalar_lea.vmem [#allocation8], %s329_s30 }
  0x42   : > { %178 = vadd.xlane.f32.xlu0 %v177_v4  ;;  %s238_s8 = sshll.u32 %s171_s7, 4  ;;  %s224_s21 = scalar_lea.sflag [#allocation5], %s639_s29  ;;  %s239_s8 = int_to_ptr.vmem [resolvable:$true] %s238_s8 }
  0x43   : > { %v215_v26 = vunpack.c.0.s8 %v214_v24  ;;  %s445_s22 = scalar_lea.vmem %s239_s8, 128  ;;  %p707_p8 = scmp.ne.s32.totalorder %s701_s25, 0 }
  0x44   : > { %p446_p6 = scmp.ne.s32.totalorder %s239_s8, %s445_s22  ;;  %s520_s23 = smov [#allocation8]  }
  0x45   : > { %v189_v8 = vstv %s187_s17  ;;  %v218_v28 = vsub.s32 %v215_v26, %v217_v27  ;;  %s449_s26 = sshll.u32 %s520_s23, 4  ;;  %s450_s26 = int_to_ptr.vmem [resolvable:$false] %s449_s26 }
  0x46   : > { %v194_v9 = vstv %s331_s15  ;;  %p447_p7 = pnand %p446_p6, %p707_p8  ;;  %s451_s13 = scalar_lea.vmem %s450_s26, 256 }
  0x47   : > { %v199_v10 = vstv %s332_s5  ;;  %p452_p11 = scmp.lt.s32.totalorder %s239_s8, %s450_s26  ;;  %p453_p0 = scmp.lt.s32.totalorder %s451_s13, %s445_s22 }
  0x48   : > { %p448_p10 = pneg %p447_p7 }
  0x49   : > { %p454_p3 = por %p453_p0, %p452_p11 }
  0x4b   : > { %p455_p5 = pnand %p454_p3, %p448_p10 }
  0xcb   : > { %v179_v6 = vpop.xlane.xlu0 %178 }
  0xcc   : > { %v180_v7 = vmul.f32 0.00390625, %v179_v6 }
  0xce   : > { %186 = vst.msk [vmem:[#allocation2 + $0x8] sm:$0xf] %vm185_vm3, %v180_v7 }
  0xd5   : > { %v188_v11 = vld [vmem:[#allocation2 + $0x7] sm:$0xf] }
  0xd6   : > { %v193_v12 = vld [vmem:[#allocation2 + $0x8] sm:$0xf]  ;;  %v190_v14 = vmul.f32 %v189_v8, %v188_v11 }
  0xd7   : > { %v198_v13 = vld [vmem:[#allocation2 + $0x9] sm:$0xf]  ;;  %v195_v15 = vmul.f32 %v194_v9, %v193_v12 }
  0xd8   : > { %v200_v17 = vmul.f32 %v199_v10, %v198_v13 }
  0xd9   : > { %v196_v16 = vadd.f32 %v195_v15, %v190_v14 }
  0xdb   : > { %v201_v18 = vadd.f32 %v200_v17, %v196_v16 }
  0xdd   : > { %v333_v19 = vmul.f32 -1.442695, %v201_v18 }
  0xdf   : > { %402 = vpow2.f32 %v333_v19 }
  0xec   : > { %v403_v20 = vpop.eup %402 }
  0xed   : > { %v205_v21 = vadd.f32 1.0, %v403_v20 }
  0xef   : > { %404 = vrcp.f32 %v205_v21 }
  0xfc   : > { %v405_v22 = vpop.eup %404 }
  0xfd   : > { %211 = vperm.xlu0 %401, %v405_v22  }
 0x178   : > { %v212_v30 = vpop.permute.xlu0 %211 }
 0x179   : > { %v219_v31 = vrot.slane %v212_v30, %v218_v28 }
 0x17b   : > { %v221_v32 = vmul.f32 %v219_v31, %v208_v29 }
 0x17d   : > { %222 = vst [vmem:[%s171_s7] sm:$0xff] %v221_v32 }
 0x17e   : > { %458 = shalt.err (!%p455_p5)
}
 0x17f   : > { %s459_s27 = scalar_lea.hbm %s236_s20, 128  ;;  %s463_s30 = scalar_lea.hbm %s693_s2, 256 }
 0x180   : > { %p460_p2 = scmp.ne.s32.totalorder %s236_s20, %s459_s27  ;;  %p464_p9 = scmp.lt.s32.totalorder %s236_s20, %s693_s2 }
 0x181   : > { %p465_p1 = scmp.lt.s32.totalorder %s463_s30, %s459_s27 }
 0x182   : > { %p461_p12 = pnand %p460_p2, %p707_p8 }
 0x183   : > { %p466_p4 = por %p465_p1, %p464_p9 }
 0x184   : > { %p462_p13 = pneg %p461_p12 }
 0x186   : > { %p467_p6 = pnand %p466_p4, %p462_p13 }
 0x188   : > { %470 = shalt.err (!%p467_p6)
}
 0x189   : > { %347 = dma.vmem_to_hbm [thread:$0]  (%p707_p8), %s239_s8, 128, %s236_s20, %s224_s21  }
 0x18a PF: > { %s250_s17 = sand.u32 1, %s501_s9   ;;  %p708_p7 = scmp.ne.s32.totalorder %s699_s16, 0 }
 0x18b   : > { %p709_p10 = scmp.ge.s32.totalorder %s513_s12, 2  ;;  %s251_s15 = scalar_lea.sflag [#allocation5], %s250_s17 }
 0x18d   : > { %p358_p11 = pnand %p709_p10, %p708_p7 }
 0x18f   : > { %p359_p0 = pneg %p358_p11 }
 0x191   : > { %496 = dma.done.wait (%p359_p0), %s251_s15, 128  }
 0x192   : > { %498 = vsyncadd (%p359_p0), %s251_s15, 4294967168  ;;  %p16_p3 = scmp.ge.s32.totalorder %s582_s18, 4   ;;  %s710_s9 = smov %s505_s10 }
 0x193   : > { %s711_s10 = smov %s509_s11  ;;  %s712_s11 = smov %s599_s24 }
 0x194   : > { %s713_s12 = smov %s582_s18  ;;  %18 = sbr.rel (!%p16_p3) target bundleno = 6 (0x6), region = 78 }
 0x199   :  { %256 = vsyncpa [#allocation4], 1 }
 0x19a   :  { %258 = vsyncpa [#allocation4 + $0x1], 1 }
 0x19b   :  { %259 = vsyncpa [#allocation5], 1 }
 0x19c   :  { %261 = vsyncpa [#allocation5 + $0x1], 1 }
 0x19d   :  { %262 = vsyncpa [#allocation6], 1 }
 0x19e   :  { %264 = vsyncpa [#allocation6 + $0x1], 1 }

</bundles_post_ra>
